<compile_context>
chip_gen: v5e
topology: v5e:2x2
jax: 0.10.0
libtpu: 0.0.40
codegen_flags: <defaults>
</compile_context>

<pallas_src>
import functools

import jax
import jax.numpy as jnp
from jax.experimental import pallas as pl
from jax.experimental.pallas import tpu as pltpu


def _mlp_kernel(x_ref,
                w1, b1, w2, b2, w3, b3, w4, b4, w5, b5, w6t, b6,
                o_ref, *, chunk):
    """Fused 6-layer MLP + sigmoid. Batch on lanes; inner loop over lane chunks."""
    # Hoist all weight/bias loads out of the chunk loop (JAX does not CSE these).
    w1v, b1v = w1[...], b1[...]
    w2v, b2v = w2[...], b2[...]
    w3v, b3v = w3[...], b3[...]
    w4v, b4v = w4[...], b4[...]
    w5v, b5v = w5[...], b5[...]
    w6v, b6v = w6t[...], b6[...]

    tile = x_ref.shape[-1]
    n_chunks = tile // chunk

    def lin_relu(h, w, b):
        # W (out,in) @ h (in,Tc) -> (out,Tc); bias (out,1) broadcasts along lanes.
        y = jnp.dot(w, h, preferred_element_type=jnp.float32) + b
        return jnp.maximum(y, 0.0)

    def body(j, carry):
        off = pl.multiple_of(j * chunk, 128)
        x = x_ref[:, pl.ds(off, chunk)]                         # (1, Tc)

        # Layer 1 (in_dim=1): outer product -> VPU broadcast multiply-add, no MXU.
        h = jnp.maximum(w1v * x + b1v, 0.0)                     # (16, Tc)
        h = lin_relu(h, w2v, b2v)                               # (32, Tc)
        h = lin_relu(h, w3v, b3v)                               # (64, Tc)
        h = lin_relu(h, w4v, b4v)                               # (32, Tc)
        h = lin_relu(h, w5v, b5v)                               # (16, Tc)

        # Layer 6 (out_dim=1): weighted sublane reduction instead of an M=1 matmul.
        y = jnp.sum(w6v * h, axis=0, keepdims=True) + b6v       # (1, Tc)
        y = jnp.maximum(y, 0.0)                                 # final Linear -> ReLU

        # TODO(synk): training-mode Dropout (p=0.2) is not modeled; eval-mode dropout = identity.
        o_ref[:, pl.ds(off, chunk)] = jax.nn.sigmoid(y).astype(o_ref.dtype)
        return carry

    jax.lax.fori_loop(0, n_chunks, body, 0, unroll=min(n_chunks, 8))


def _pick_chunk(tile):
    """Largest compute chunk (<=512 lanes) that divides the grid tile."""
    for c in (512, 256, 128):
        if tile % c == 0:
            return c
    return tile


def reverse_autoencoder_forward(x, params, *, tile_batch=8192):
    """x: (N, 1) float32.  params: 6 PyTorch-layout pairs (W (out,in), b (out,))."""
    assert tile_batch % 128 == 0, "tile_batch must be a multiple of 128 (lane width)"
    N = x.shape[0]

    # Clamp the tile to the problem: don't pad a small batch up to a huge tile,
    # and keep >= 2 grid tiles when N allows it (v7x megacore 'parallel' sharding).
    half_rounded = ((-(-N // 2) + 127) // 128) * 128            # round_up(ceil(N/2), 128)
    tile_eff = min(tile_batch, max(128, half_rounded))

    n_tiles = pl.cdiv(N, tile_eff)
    n_pad = n_tiles * tile_eff
    chunk = _pick_chunk(tile_eff)

    # Batch-on-lanes layout: (1, n_pad), lane-dense input and output.
    x_lanes = jnp.pad(x[:, 0].reshape(1, N), ((0, 0), (0, n_pad - N)))

    # Kernel-friendly parameter shapes (tiny host-side reshapes, once per call).
    flat_params = []
    in_specs = [pl.BlockSpec((1, tile_eff), lambda i: (0, i))]
    n_layers = len(params)
    for idx, (w, b) in enumerate(params):
        w_k = w.T if idx == n_layers - 1 else w                 # last layer: (1,16) -> (16,1)
        b_k = b.reshape(-1, 1)                                  # (out, 1)
        in_specs.append(pl.BlockSpec(w_k.shape, lambda i: (0, 0)))
        in_specs.append(pl.BlockSpec(b_k.shape, lambda i: (0, 0)))
        flat_params.extend([w_k, b_k])

    out_spec = pl.BlockSpec((1, tile_eff), lambda i: (0, i))

    # Advisory cost hint so XLA schedules/overlaps this custom call sensibly.
    flops_per_sample = 2 * sum(int(w.shape[0]) * int(w.shape[1]) for w, _ in params)
    weight_bytes = sum(int(w.size) * 4 + int(b.size) * 4 for w, b in params)
    cost = pl.CostEstimate(
        flops=flops_per_sample * n_pad,
        transcendentals=n_pad,                                  # sigmoid exp per sample
        bytes_accessed=8 * n_pad + weight_bytes)

    # VMEM budget: double-buffered (1, tile) f32 in/out blocks + padded weight
    # blocks + scratch headroom; portable across v5e/v6e/v7x VMEM limits.
    vmem_bytes = 4 * (4 * tile_eff) + 2 * (1 << 20) + 8 * (1 << 20)
    vmem_limit = int(min(max(vmem_bytes, 16 * (1 << 20)), 100 * (1 << 20)))

    out = pl.pallas_call(
        functools.partial(_mlp_kernel, chunk=chunk),
        out_shape=jax.ShapeDtypeStruct((1, n_pad), jnp.float32),
        grid=(n_tiles,),
        in_specs=in_specs,
        out_specs=out_spec,
        compiler_params=pltpu.CompilerParams(
            dimension_semantics=("parallel",),
            vmem_limit_bytes=vmem_limit),
        cost_estimate=cost,
    )(x_lanes, *flat_params)

    return out[0, :N].reshape(N, 1)


def init_params(key, input_dim=1, n_layers=3):
    """Deterministic PyTorch-style U(-1/sqrt(fan_in), 1/sqrt(fan_in)) init, PyTorch layout."""
    hidden_up = [2 ** (i + 3) for i in range(1, n_layers + 1)]         # [16, 32, 64]
    hidden_down = hidden_up[::-1] + [input_dim]                        # [64, 32, 16, 1]

    sizes = []
    d = input_dim
    for i in range(n_layers):
        sizes.append((d, hidden_up[i]))
        d = hidden_up[i]
    for i in range(n_layers):
        sizes.append((hidden_down[i], hidden_down[i + 1]))
    # sizes = [(1,16),(16,32),(32,64),(64,32),(32,16),(16,1)]

    params = []
    for (fan_in, fan_out) in sizes:
        key, kw, kb = jax.random.split(key, 3)
        bound = 1.0 / float(fan_in) ** 0.5
        w = jax.random.uniform(kw, (fan_out, fan_in), jnp.float32, -bound, bound)  # (out, in)
        b = jax.random.uniform(kb, (fan_out,), jnp.float32, -bound, bound)
        params.append((w, b))
    return params


def _reference_forward(x, params):
    """Pure-JAX reference for correctness checking (mirrors the PyTorch forward)."""
    h = x
    for (w, b) in params:
        h = jnp.maximum(jnp.dot(h, w.T) + b, 0.0)
    return jax.nn.sigmoid(h)


if __name__ == "__main__":
    key = jax.random.PRNGKey(0)
    k_params, k_x = jax.random.split(key)

    params = init_params(k_params, input_dim=1, n_layers=3)

    # Small-batch path: tile is clamped to 128 lanes, 2 parallel grid tiles.
    N_small = 200
    x_small = jax.random.normal(jax.random.fold_in(k_x, 0), (N_small, 1), jnp.float32)
    out_small = jax.block_until_ready(reverse_autoencoder_forward(x_small, params))
    ref_small = _reference_forward(x_small, params)
    assert out_small.shape == (N_small, 1)
    assert jnp.allclose(out_small, ref_small, atol=2e-5, rtol=2e-5), \
        "Pallas output mismatch vs reference (small batch)"

    # Larger batch exercising the inner lane-chunk loop (tile 1024, chunk 512, 2 tiles).
    N_big = 2000
    x_big = jax.random.normal(jax.random.fold_in(k_x, 1), (N_big, 1), jnp.float32)
    out_big = jax.block_until_ready(
        reverse_autoencoder_forward(x_big, params, tile_batch=1024))
    ref_big = _reference_forward(x_big, params)
    assert out_big.shape == (N_big, 1)
    assert jnp.allclose(out_big, ref_big, atol=2e-5, rtol=2e-5), \
        "Pallas output mismatch vs reference (large batch)"

    print("KERNEL_OK")
</pallas_src>

<mosaic_0001>
module attributes {stable_mosaic.version = 11 : i64} {
  func.func @_mlp_kernel(%arg0: i32, %arg1: memref<1x128xf32, #tpu.memory_space<vmem>>, %arg2: memref<16x1xf32, #tpu.memory_space<vmem>>, %arg3: memref<16x1xf32, #tpu.memory_space<vmem>>, %arg4: memref<32x16xf32, #tpu.memory_space<vmem>>, %arg5: memref<32x1xf32, #tpu.memory_space<vmem>>, %arg6: memref<64x32xf32, #tpu.memory_space<vmem>>, %arg7: memref<64x1xf32, #tpu.memory_space<vmem>>, %arg8: memref<32x64xf32, #tpu.memory_space<vmem>>, %arg9: memref<32x1xf32, #tpu.memory_space<vmem>>, %arg10: memref<16x32xf32, #tpu.memory_space<vmem>>, %arg11: memref<16x1xf32, #tpu.memory_space<vmem>>, %arg12: memref<16x1xf32, #tpu.memory_space<vmem>>, %arg13: memref<1x1xf32, #tpu.memory_space<vmem>>, %arg14: memref<1x128xf32, #tpu.memory_space<vmem>>) attributes {dimension_semantics = [#tpu.dimension_semantics<parallel>], iteration_bounds = array<i64: 2>, scalar_prefetch = 0 : i64, scratch_operands = 0 : i64, tpu.core_type = #tpu.core_type<tc>, window_params = [{transform_indices = @transform_0, window_bounds = array<i64: 1, 128>}, {pipeline_mode = #tpu.pipeline_mode<synchronous>, transform_indices = @transform_1, window_bounds = array<i64: 16, 1>}, {pipeline_mode = #tpu.pipeline_mode<synchronous>, transform_indices = @transform_2, window_bounds = array<i64: 16, 1>}, {pipeline_mode = #tpu.pipeline_mode<synchronous>, transform_indices = @transform_3, window_bounds = array<i64: 32, 16>}, {pipeline_mode = #tpu.pipeline_mode<synchronous>, transform_indices = @transform_4, window_bounds = array<i64: 32, 1>}, {pipeline_mode = #tpu.pipeline_mode<synchronous>, transform_indices = @transform_5, window_bounds = array<i64: 64, 32>}, {pipeline_mode = #tpu.pipeline_mode<synchronous>, transform_indices = @transform_6, window_bounds = array<i64: 64, 1>}, {pipeline_mode = #tpu.pipeline_mode<synchronous>, transform_indices = @transform_7, window_bounds = array<i64: 32, 64>}, {pipeline_mode = #tpu.pipeline_mode<synchronous>, transform_indices = @transform_8, window_bounds = array<i64: 32, 1>}, {pipeline_mode = #tpu.pipeline_mode<synchronous>, transform_indices = @transform_9, window_bounds = array<i64: 16, 32>}, {pipeline_mode = #tpu.pipeline_mode<synchronous>, transform_indices = @transform_10, window_bounds = array<i64: 16, 1>}, {pipeline_mode = #tpu.pipeline_mode<synchronous>, transform_indices = @transform_11, window_bounds = array<i64: 16, 1>}, {pipeline_mode = #tpu.pipeline_mode<synchronous>, transform_indices = @transform_12, window_bounds = array<i64: 1, 1>}, {transform_indices = @transform_13, window_bounds = array<i64: 1, 128>}]} {
    %c0 = arith.constant 0 : index
    %c0_0 = arith.constant 0 : index
    %0 = vector.load %arg2[%c0, %c0_0] : memref<16x1xf32, #tpu.memory_space<vmem>>, vector<16x1xf32>
    %c0_1 = arith.constant 0 : index
    %c0_2 = arith.constant 0 : index
    %1 = vector.load %arg3[%c0_1, %c0_2] : memref<16x1xf32, #tpu.memory_space<vmem>>, vector<16x1xf32>
    %c0_3 = arith.constant 0 : index
    %c0_4 = arith.constant 0 : index
    %2 = vector.load %arg4[%c0_3, %c0_4] : memref<32x16xf32, #tpu.memory_space<vmem>>, vector<32x16xf32>
    %c0_5 = arith.constant 0 : index
    %c0_6 = arith.constant 0 : index
    %3 = vector.load %arg5[%c0_5, %c0_6] : memref<32x1xf32, #tpu.memory_space<vmem>>, vector<32x1xf32>
    %c0_7 = arith.constant 0 : index
    %c0_8 = arith.constant 0 : index
    %4 = vector.load %arg6[%c0_7, %c0_8] : memref<64x32xf32, #tpu.memory_space<vmem>>, vector<64x32xf32>
    %c0_9 = arith.constant 0 : index
    %c0_10 = arith.constant 0 : index
    %5 = vector.load %arg7[%c0_9, %c0_10] : memref<64x1xf32, #tpu.memory_space<vmem>>, vector<64x1xf32>
    %c0_11 = arith.constant 0 : index
    %c0_12 = arith.constant 0 : index
    %6 = vector.load %arg8[%c0_11, %c0_12] : memref<32x64xf32, #tpu.memory_space<vmem>>, vector<32x64xf32>
    %c0_13 = arith.constant 0 : index
    %c0_14 = arith.constant 0 : index
    %7 = vector.load %arg9[%c0_13, %c0_14] : memref<32x1xf32, #tpu.memory_space<vmem>>, vector<32x1xf32>
    %c0_15 = arith.constant 0 : index
    %c0_16 = arith.constant 0 : index
    %8 = vector.load %arg10[%c0_15, %c0_16] : memref<16x32xf32, #tpu.memory_space<vmem>>, vector<16x32xf32>
    %c0_17 = arith.constant 0 : index
    %c0_18 = arith.constant 0 : index
    %9 = vector.load %arg11[%c0_17, %c0_18] : memref<16x1xf32, #tpu.memory_space<vmem>>, vector<16x1xf32>
    %c0_19 = arith.constant 0 : index
    %c0_20 = arith.constant 0 : index
    %10 = vector.load %arg12[%c0_19, %c0_20] : memref<16x1xf32, #tpu.memory_space<vmem>>, vector<16x1xf32>
    %c0_21 = arith.constant 0 : index
    %c0_22 = arith.constant 0 : index
    %11 = vector.load %arg13[%c0_21, %c0_22] : memref<1x1xf32, #tpu.memory_space<vmem>>, vector<1x1xf32>
    %c0_i32 = arith.constant 0 : i32
    %c128_i32 = arith.constant 128 : i32
    %12 = arith.muli %c0_i32, %c128_i32 : i32
    %13 = tpu.assume_multiple %12, 128 : i32
    %c0_23 = arith.constant 0 : index
    %14 = arith.index_cast %13 : i32 to index
    %15 = vector.load %arg1[%c0_23, %14] : memref<1x128xf32, #tpu.memory_space<vmem>>, vector<1x128xf32>
    %16 = vector.broadcast %0 : vector<16x1xf32> to vector<16x128xf32>
    %17 = vector.broadcast %15 : vector<1x128xf32> to vector<16x128xf32>
    %18 = arith.mulf %16, %17 : vector<16x128xf32>
    %19 = vector.broadcast %1 : vector<16x1xf32> to vector<16x128xf32>
    %20 = arith.addf %18, %19 : vector<16x128xf32>
    %cst = arith.constant 0.000000e+00 : f32
    %21 = vector.broadcast %cst : f32 to vector<16x128xf32>
    %22 = arith.maximumf %20, %21 : vector<16x128xf32>
    %cst_24 = arith.constant dense<0.000000e+00> : vector<32x128xf32>
    %23 = tpu.matmul %2, %22, %cst_24 {dimension_numbers = #tpu.dot_dimension_numbers<[1], [0], [0], [1], [0, 0, 1, 1], [], []>} : vector<32x16xf32>, vector<16x128xf32>, vector<32x128xf32> -> vector<32x128xf32>
    %24 = vector.broadcast %3 : vector<32x1xf32> to vector<32x128xf32>
    %25 = arith.addf %23, %24 : vector<32x128xf32>
    %cst_25 = arith.constant 0.000000e+00 : f32
    %26 = vector.broadcast %cst_25 : f32 to vector<32x128xf32>
    %27 = arith.maximumf %25, %26 : vector<32x128xf32>
    %cst_26 = arith.constant dense<0.000000e+00> : vector<64x128xf32>
    %28 = tpu.matmul %4, %27, %cst_26 {dimension_numbers = #tpu.dot_dimension_numbers<[1], [0], [0], [1], [0, 0, 1, 1], [], []>} : vector<64x32xf32>, vector<32x128xf32>, vector<64x128xf32> -> vector<64x128xf32>
    %29 = vector.broadcast %5 : vector<64x1xf32> to vector<64x128xf32>
    %30 = arith.addf %28, %29 : vector<64x128xf32>
    %cst_27 = arith.constant 0.000000e+00 : f32
    %31 = vector.broadcast %cst_27 : f32 to vector<64x128xf32>
    %32 = arith.maximumf %30, %31 : vector<64x128xf32>
    %cst_28 = arith.constant dense<0.000000e+00> : vector<32x128xf32>
    %33 = tpu.matmul %6, %32, %cst_28 {dimension_numbers = #tpu.dot_dimension_numbers<[1], [0], [0], [1], [0, 0, 1, 1], [], []>} : vector<32x64xf32>, vector<64x128xf32>, vector<32x128xf32> -> vector<32x128xf32>
    %34 = vector.broadcast %7 : vector<32x1xf32> to vector<32x128xf32>
    %35 = arith.addf %33, %34 : vector<32x128xf32>
    %cst_29 = arith.constant 0.000000e+00 : f32
    %36 = vector.broadcast %cst_29 : f32 to vector<32x128xf32>
    %37 = arith.maximumf %35, %36 : vector<32x128xf32>
    %cst_30 = arith.constant dense<0.000000e+00> : vector<16x128xf32>
    %38 = tpu.matmul %8, %37, %cst_30 {dimension_numbers = #tpu.dot_dimension_numbers<[1], [0], [0], [1], [0, 0, 1, 1], [], []>} : vector<16x32xf32>, vector<32x128xf32>, vector<16x128xf32> -> vector<16x128xf32>
    %39 = vector.broadcast %9 : vector<16x1xf32> to vector<16x128xf32>
    %40 = arith.addf %38, %39 : vector<16x128xf32>
    %cst_31 = arith.constant 0.000000e+00 : f32
    %41 = vector.broadcast %cst_31 : f32 to vector<16x128xf32>
    %42 = arith.maximumf %40, %41 : vector<16x128xf32>
    %43 = vector.broadcast %10 : vector<16x1xf32> to vector<16x128xf32>
    %44 = arith.mulf %43, %42 : vector<16x128xf32>
    %cst_32 = arith.constant dense<0.000000e+00> : vector<128xf32>
    %45 = vector.multi_reduction <add>, %44, %cst_32 [0] : vector<16x128xf32> to vector<128xf32>
    %46 = vector.shape_cast %45 : vector<128xf32> to vector<1x128xf32>
    %47 = vector.broadcast %11 : vector<1x1xf32> to vector<1x128xf32>
    %48 = arith.addf %46, %47 : vector<1x128xf32>
    %cst_33 = arith.constant 0.000000e+00 : f32
    %49 = vector.broadcast %cst_33 : f32 to vector<1x128xf32>
    %50 = arith.maximumf %48, %49 : vector<1x128xf32>
    %51 = arith.negf %50 : vector<1x128xf32>
    %52 = math.exp %51 : vector<1x128xf32>
    %cst_34 = arith.constant 1.000000e+00 : f32
    %53 = vector.broadcast %cst_34 : f32 to vector<1x128xf32>
    %54 = arith.addf %53, %52 : vector<1x128xf32>
    %55 = arith.divf %53, %54 : vector<1x128xf32>
    %c0_35 = arith.constant 0 : index
    %56 = arith.index_cast %13 : i32 to index
    %57 = vector.load %arg14[%c0_35, %56] : memref<1x128xf32, #tpu.memory_space<vmem>>, vector<1x128xf32>
    tpu.vector_store %arg14[%c0_35, %56], %55 {strides = array<i32>} : memref<1x128xf32, #tpu.memory_space<vmem>>, vector<1x128xf32>,
    %c1_i32 = arith.constant 1 : i32
    return
  }
  func.func @transform_0(%arg0: i32) -> (i32, i32) {
    %c0_i32 = arith.constant 0 : i32
    %c0_i32_0 = arith.constant 0 : i32
    return %c0_i32, %arg0 : i32, i32
  }
  func.func @transform_1(%arg0: i32) -> (i32, i32) {
    %c0_i32 = arith.constant 0 : i32
    %c0_i32_0 = arith.constant 0 : i32
    %c0_i32_1 = arith.constant 0 : i32
    return %c0_i32, %c0_i32_0 : i32, i32
  }
  func.func @transform_2(%arg0: i32) -> (i32, i32) {
    %c0_i32 = arith.constant 0 : i32
    %c0_i32_0 = arith.constant 0 : i32
    %c0_i32_1 = arith.constant 0 : i32
    return %c0_i32, %c0_i32_0 : i32, i32
  }
  func.func @transform_3(%arg0: i32) -> (i32, i32) {
    %c0_i32 = arith.constant 0 : i32
    %c0_i32_0 = arith.constant 0 : i32
    %c0_i32_1 = arith.constant 0 : i32
    return %c0_i32, %c0_i32_0 : i32, i32
  }
  func.func @transform_4(%arg0: i32) -> (i32, i32) {
    %c0_i32 = arith.constant 0 : i32
    %c0_i32_0 = arith.constant 0 : i32
    %c0_i32_1 = arith.constant 0 : i32
    return %c0_i32, %c0_i32_0 : i32, i32
  }
  func.func @transform_5(%arg0: i32) -> (i32, i32) {
    %c0_i32 = arith.constant 0 : i32
    %c0_i32_0 = arith.constant 0 : i32
    %c0_i32_1 = arith.constant 0 : i32
    return %c0_i32, %c0_i32_0 : i32, i32
  }
  func.func @transform_6(%arg0: i32) -> (i32, i32) {
    %c0_i32 = arith.constant 0 : i32
    %c0_i32_0 = arith.constant 0 : i32
    %c0_i32_1 = arith.constant 0 : i32
    return %c0_i32, %c0_i32_0 : i32, i32
  }
  func.func @transform_7(%arg0: i32) -> (i32, i32) {
    %c0_i32 = arith.constant 0 : i32
    %c0_i32_0 = arith.constant 0 : i32
    %c0_i32_1 = arith.constant 0 : i32
    return %c0_i32, %c0_i32_0 : i32, i32
  }
  func.func @transform_8(%arg0: i32) -> (i32, i32) {
    %c0_i32 = arith.constant 0 : i32
    %c0_i32_0 = arith.constant 0 : i32
    %c0_i32_1 = arith.constant 0 : i32
    return %c0_i32, %c0_i32_0 : i32, i32
  }
  func.func @transform_9(%arg0: i32) -> (i32, i32) {
    %c0_i32 = arith.constant 0 : i32
    %c0_i32_0 = arith.constant 0 : i32
    %c0_i32_1 = arith.constant 0 : i32
    return %c0_i32, %c0_i32_0 : i32, i32
  }
  func.func @transform_10(%arg0: i32) -> (i32, i32) {
    %c0_i32 = arith.constant 0 : i32
    %c0_i32_0 = arith.constant 0 : i32
    %c0_i32_1 = arith.constant 0 : i32
    return %c0_i32, %c0_i32_0 : i32, i32
  }
  func.func @transform_11(%arg0: i32) -> (i32, i32) {
    %c0_i32 = arith.constant 0 : i32
    %c0_i32_0 = arith.constant 0 : i32
    %c0_i32_1 = arith.constant 0 : i32
    return %c0_i32, %c0_i32_0 : i32, i32
  }
  func.func @transform_12(%arg0: i32) -> (i32, i32) {
    %c0_i32 = arith.constant 0 : i32
    %c0_i32_0 = arith.constant 0 : i32
    %c0_i32_1 = arith.constant 0 : i32
    return %c0_i32, %c0_i32_0 : i32, i32
  }
  func.func @transform_13(%arg0: i32) -> (i32, i32) {
    %c0_i32 = arith.constant 0 : i32
    %c0_i32_0 = arith.constant 0 : i32
    return %c0_i32, %arg0 : i32, i32
  }
}

</mosaic_0001>

<bundles_post_ra>
// kernel: tpu_custom_call.1
= control target key start
LH: loop header
LB: loop body
LE: loop exit
PB: predicated region body
PF: predicated region fallthrough
CT: control target
= control target key end

     0   :  { %s1350_s0 = inlined_call_operand.vmem [shape: f32[1,256], index: 0, kind: input, shape index: {}]   ;;  %s1351_s1 = inlined_call_operand.vmem [shape: f32[16,1], index: 1, kind: input, shape index: {}]   ;;  %s1352_s2 = inlined_call_operand.vmem [shape: f32[16,1], index: 2, kind: input, shape index: {}]   ;;  %s1353_s3 = inlined_call_operand.vmem [shape: f32[32,16], index: 3, kind: input, shape index: {}]   ;;  %s1354_s4 = inlined_call_operand.vmem [shape: f32[32,1], index: 4, kind: input, shape index: {}]   ;;  %s1355_s5 = inlined_call_operand.vmem [shape: f32[64,32], index: 5, kind: input, shape index: {}]   ;;  %s1356_s6 = inlined_call_operand.vmem [shape: f32[64,1], index: 6, kind: input, shape index: {}]   ;;  %s1357_s7 = inlined_call_operand.vmem [shape: f32[32,64], index: 7, kind: input, shape index: {}]   ;;  %s1358_s8 = inlined_call_operand.vmem [shape: f32[32,1], index: 8, kind: input, shape index: {}]   ;;  %s1359_s9 = inlined_call_operand.vmem [shape: f32[16,32], index: 9, kind: input, shape index: {}]   ;;  %s1360_s10 = inlined_call_operand.vmem [shape: f32[16,1], index: 10, kind: input, shape index: {}]   ;;  %s1361_s11 = inlined_call_operand.vmem [shape: f32[16,1], index: 11, kind: input, shape index: {}]   ;;  %s1362_s12 = inlined_call_operand.<no memory space> [shape: f32[1,1], index: 12, kind: input, shape index: {}]   ;;  %s1363_s13 = inlined_call_operand.hbm [shape: f32[1,256], index: 13, kind: output, shape index: {}]  }
   0x1   :  { %v18_v0 = vstv %s1362_s12 }
   0x2   :  { %19 = vst [vmem:[#allocation2] sm:$0x1] %v18_v0 }
   0x3   :  { %20 = vsyncpa [#allocation4], 0 }
   0x4   :  { %22 = vsyncpa [#allocation4 + $0x1], 0  ;;  %s1121_s27 = smov 0   ;;  %s1123_s28 = smov 0  }
   0x5   :  { %s1125_s29 = smov 0   ;;  %s1127_s30 = smov 0  }
   0x6 LB: > { %1367 = sst [smem:[#allocation6_spill]] %s1041_s29  ;;  %s1142_s12 = sadd.s32 4294967295, %s1045_s30   ;;  %s1045_s30 = sphi %s1127_s30, %s1372_s30   ;;  %s1041_s29 = sphi %s1125_s29, %s1374_s29   ;;  %s1037_s28 = sphi %s1123_s28, %s1376_s28   ;;  %s1033_s27 = sphi %s1121_s27, %s1375_s27  }
   0x7   : > { %s906_s14 = sadd.s32 4294967294, %s1045_s30   ;;  %s1146_s15 = sadd.s32 1, %s1045_s30  }
   0x8   : > { %1368 = sst [smem:[#allocation7_spill]] %s1146_s15  ;;  %s313_s16 = sadd.s32 1, %s1041_s29 }
   0x9   : > { %s310_s17 = ssub.s32 %s1045_s30, %s1146_s15  ;;  %p323_p0 = scmp.ne.s32.totalorder %s1041_s29, %s1037_s28 }
   0xa   : > { %p311_p1 = scmp.eq.s32.totalorder %s310_s17, 0  ;;  %p324_p2 = scmp.eq.s32.totalorder %s1142_s12, 1 }
   0xb   : > { %p329_p3 = scmp.ne.s32.totalorder %s1037_s28, %s1033_s27  ;;  %p330_p4 = scmp.eq.s32.totalorder %s906_s14, 1 }
   0xc   : > { %s1157_s18 = scalar_select %p311_p1, %s1041_s29, %s313_s16  }
   0xd   : > { %p1159_p5 = por %p324_p2, %p323_p0  ;;  %p1163_p6 = por %p330_p4, %p329_p3 }
   0xe   : > { %1369 = sst [smem:[#allocation8_spill]] %s1157_s18  ;;  %p909_p7 = scmp.ge.s32.totalorder %s1045_s30, 1 }
   0xf   : > { %p390_p8 = scmp.lt.s32.totalorder %s1045_s30, 3 }
  0x11   : > { %p391_p9 = pnand %p909_p7, %p390_p8 }
  0x12   : > { %p431_p10 = scmp.lt.s32.totalorder (!%p391_p9), %s1142_s12, 1  ;;  %s429_s18 = sand.u32 (!%p391_p9), 1, %s1037_s28  }
  0x13   : > { %394 = sbr.rel (%p391_p9) target bundleno = 850 (0x352), region = 72  ;;  %s850_s15 = scalar_lea.hbm (!%p391_p9), %s1363_s13, %s1142_s12 }
  0x14   : > { %s430_s26 = scalar_lea.vmem (!%p391_p9), [#allocation3], %s429_s18  ;;  %s1003_s23 = scalar_lea.hbm (!%p391_p9), %s1363_s13, 2 }
  0x15   : > { %s852_s14 = sshll.u32 (!%p391_p9), %s430_s26, 4  ;;  %s853_s14 = int_to_ptr.vmem [resolvable:$true] %s852_s14 }
  0x18   : > { %v437_v1 = vld [vmem:[%s1352_s2 + $0x8] sm:$0xff]  ;;  %v1047_v3 = vmov 0   ;;  %s1177_s25 = scalar_select %p431_p10, %s1142_s12, 1  ;;  %v436_v4 = vld [vmem:[%s1352_s2] sm:$0xff]  ;;  %v460_v9 = vld [vmem:[%s1356_s6 + $0x30] sm:$0xff]  ;;  %vm527_vm0 = vcmask 130048  }
  0x19   : > { %v435_v2 = vld [vmem:[%s1351_s1 + $0x8] sm:$0xff]  ;;  %976 = vset.pattern.permute.xlu1 %v1047_v3  ;;  %975 = vset.pattern.permute.xlu0 %v1047_v3  ;;  %v434_v5 = vld [vmem:[%s1351_s1] sm:$0xff]  ;;  %v456_v10 = vld [vmem:[%s1356_s6 + $0x10] sm:$0xff]  ;;  %vm613_vm1 = vcmask 261120   ;;  %vm707_vm2 = vcmask 523264  }
  0x1a   : > { %500 = vperm.xlu1 %976, %v437_v1   ;;  %485 = vperm.xlu0 %975, %v435_v2   ;;  %s433_s16 = scalar_lea.vmem %s1350_s0, %s1177_s25  ;;  %v442_v6 = vld [vmem:[%s1354_s4] sm:$0xff]  ;;  %v443_v7 = vld [vmem:[%s1354_s4 + $0x8] sm:$0xff]  ;;  %v457_v11 = vld [vmem:[%s1356_s6 + $0x18] sm:$0xff]  ;;  %s854_s25 = sshll.u32 %s850_s15, 4  ;;  %s855_s25 = int_to_ptr.hbm [resolvable:$true] %s854_s25 }
  0x1b   : > { %977 = vset.pattern.permute.xlu2 %v1047_v3  ;;  %v459_v8 = vld [vmem:[%s1356_s6 + $0x28] sm:$0xff]  ;;  %v469_v12 = vld [vmem:[%s1358_s8 + $0x18] sm:$0xff]  ;;  %v454_v13 = vld [vmem:[%s1356_s6] sm:$0xff]  ;;  %s997_s12 = sshra.s32 %s855_s25, 4  ;;  %s998_s12 = int_to_ptr.hbm [resolvable:$true] %s997_s12 }
  0x1c   : > { %v466_v14 = vld [vmem:[%s1358_s8] sm:$0xff]  ;;  %v467_v15 = vld [vmem:[%s1358_s8 + $0x8] sm:$0xff]  ;;  %v445_v19 = vld [vmem:[%s1354_s4 + $0x18] sm:$0xff]  ;;  %s999_s17 = scalar_lea.hbm %s998_s12, 1  ;;  %p1004_p0 = scmp.lt.s32.totalorder %s998_s12, %s1363_s13 }
  0x1d   : > { %v474_v16 = vld [vmem:[%s1361_s11] sm:$0xff]  ;;  %v473_v17 = vld [vmem:[%s1360_s10 + $0x8] sm:$0xff]  ;;  %524 = vperm.xlu2 %977, %v445_v19   ;;  %v444_v20 = vld [vmem:[%s1354_s4 + $0x10] sm:$0xff]  ;;  %p1000_p11 = scmp.ne.s32.totalorder %s998_s12, %s999_s17  ;;  %p1005_p1 = scmp.lt.s32.totalorder %s1003_s23, %s999_s17 }
  0x1e   : > { %v476_v18 = vld [vmem:[#allocation2] sm:$0x1]  ;;  %v461_v21 = vld [vmem:[%s1356_s6 + $0x38] sm:$0xff]  ;;  %v455_v30 = vld [vmem:[%s1356_s6 + $0x8] sm:$0xff] }
  0x1f   : > { %v978_v22 = vld [vmem:[%s433_s16] ss:$0 sm:$0xff]  ;;  %v468_v36 = vld [vmem:[%s1358_s8 + $0x10] sm:$0xff]  ;;  %v439_v37 = vld [vmem:[%s1353_s3 + $0x8] sm:$0xff]  ;;  %s842_s16 = scalar_lea.sflag [#allocation4], %s429_s18  ;;  %p1001_p12 = pnand %p1000_p11, %p1159_p5 }
  0x20   : > { %v458_v25 = vld [vmem:[%s1356_s6 + $0x20] sm:$0xff]  ;;  %v440_v39 = vld [vmem:[%s1353_s3 + $0x10] sm:$0xff]  ;;  %v475_v40 = vld [vmem:[%s1361_s11 + $0x8] sm:$0xff]  ;;  %p1006_p2 = por %p1005_p1, %p1004_p0 }
  0x21   : > { %v438_v35 = vld [vmem:[%s1353_s3] sm:$0xff]  ;;  %v441_v41 = vld [vmem:[%s1353_s3 + $0x18] sm:$0xff]  ;;  %v451_v59 = vld [vmem:[%s1355_s5 + $0x28] sm:$0xff]  ;;  %p1002_p13 = pneg %p1001_p12 }
  0x22   : > { %495 = vperm.xlu1 %976, %v436_v4   ;;  %480 = vperm.xlu0 %975, %v434_v5   ;;  %v472_v38 = vld [vmem:[%s1360_s10] sm:$0xff]  ;;  %v447_v60 = vld [vmem:[%s1355_s5 + $0x8] sm:$0xff]  ;;  %v452_v61 = vld [vmem:[%s1355_s5 + $0x30] sm:$0xff] }
  0x23   : > { %v446_v58 = vld [vmem:[%s1355_s5] sm:$0xff]  ;;  %v448_v62 = vld [vmem:[%s1355_s5 + $0x10] sm:$0xff]  ;;  %v453_v63 = vld [vmem:[%s1355_s5 + $0x38] sm:$0xff]  ;;  %p1007_p3 = pnand %p1006_p2, %p1002_p13 }
  0x24   : > { %v449_v0 = vld [vmem:[%s1355_s5 + $0x18] sm:$0xff]  ;;  %v450_v1 = vld [vmem:[%s1355_s5 + $0x20] sm:$0xff] }
  0x25   : > { %519 = vperm.xlu2 %977, %v444_v20  }
  0x2a   : > { %509 = vperm.xlu1 %976, %v442_v6   ;;  %514 = vperm.xlu0 %975, %v443_v7  }
  0x2d   : > { %610 = vperm.xlu2 %977, %v461_v21  }
  0x32   : > { %600 = vperm.xlu1 %976, %v459_v8   ;;  %605 = vperm.xlu0 %975, %v460_v9  }
  0x35   : > { %595 = vperm.xlu2 %977, %v458_v25  }
  0x3a   : > { %585 = vperm.xlu1 %976, %v456_v10   ;;  %590 = vperm.xlu0 %975, %v457_v11  }
  0x3d   : > { %580 = vperm.xlu2 %977, %v455_v30  }
  0x42   : > { %704 = vperm.xlu1 %976, %v469_v12   ;;  %575 = vperm.xlu0 %975, %v454_v13  }
  0x45   : > { %699 = vperm.xlu2 %977, %v468_v36   ;;  %v464_v36 = vld [vmem:[%s1357_s7 + $0x10] sm:$0xff] }
  0x4a   : > { %689 = vperm.xlu1 %976, %v466_v14   ;;  %694 = vperm.xlu0 %975, %v467_v15  }
  0x4d   : > { %755 = vperm.xlu2 %977, %v472_v38  }
  0x52   : > { %796 = vperm.xlu1 %976, %v474_v16   ;;  %760 = vperm.xlu0 %975, %v473_v17  }
  0x55   : > { %801 = vperm.xlu2 %977, %v475_v40  }
  0x5a   : > { %815 = vperm.xlu0 %975, %v476_v18  }
  0x77   : > { %v525_v44 = vpop.permute.xlu2 %524 }
  0x7f   : > { %v520_v46 = vpop.permute.xlu2 %519 }
  0x87   : > { %v611_v6 = vpop.permute.xlu2 %610 }
  0x8c   : > { %v501_v23 = vpop.permute.xlu1 %500  ;;  %v486_v24 = vpop.permute.xlu0 %485 }
  0x8d   : > { %v492_v26 = vmul.f32 %v978_v22, %v486_v24 }
  0x8f   : > { %v504_v27 = vadd.f32 %v501_v23, %v492_v26  ;;  %v596_v16 = vpop.permute.xlu2 %595 }
  0x91   : > { %v506_v28 = vmax.f32 %v504_v27, 0.0 }
  0x93   : > { %554 = vmatpush.msra.mxu0 %v506_v28 }
  0x94   : > { %v481_v29 = vpop.permute.xlu0 %480  ;;  %v496_v32 = vpop.permute.xlu1 %495 }
  0x95   : > { %v491_v31 = vmul.f32 %v978_v22, %v481_v29 }
  0x97   : > { %v503_v33 = vadd.f32 %v496_v32, %v491_v31  ;;  %v581_v26 = vpop.permute.xlu2 %580 }
  0x99   : > { %v505_v34 = vmax.f32 %v503_v33, 0.0 }
  0x9b   : > { %555 = vmatpush.msra.mxu0 %v505_v34  ;;  %v462_v34 = vld [vmem:[%s1357_s7] sm:$0xff] }
  0x9c   : > { %910 = vmatmul.msk.f32.vlgmr.msra.gmra.mxu0 %vm527_vm0, %v438_v35  ;;  %v515_v50 = vpop.permute.xlu0 %514  ;;  %v510_v53 = vpop.permute.xlu1 %509  ;;  %v463_v35 = vld [vmem:[%s1357_s7 + $0x8] sm:$0xff] }
  0xa4   : > { %911 = vmatmul.msk.f32.gmra.mxu0 %vm527_vm0, %v439_v37  ;;  %v606_v8 = vpop.permute.xlu0 %605  ;;  %v601_v12 = vpop.permute.xlu1 %600  ;;  %v465_v37 = vld [vmem:[%s1357_s7 + $0x18] sm:$0xff] }
  0xac   : > { %912 = vmatmul.msk.f32.gmra.mxu0 %vm527_vm0, %v440_v39  ;;  %v591_v18 = vpop.permute.xlu0 %590  ;;  %v586_v23 = vpop.permute.xlu1 %585 }
  0xb4   : > { %913 = vmatmul.msk.f32.gmra.mxu0 %vm527_vm0, %v441_v41  ;;  %v576_v29 = vpop.permute.xlu0 %575  ;;  %v705_v41 = vpop.permute.xlu1 %704 }
 0x119   : > { %v557_v42 = vpop.f32.mrf.mxu0 }
 0x11a   : > { %v558_v54 = vadd.f32 %v557_v42, %v510_v53  ;;  %v700_v42 = vpop.permute.xlu2 %699 }
 0x11c   : > { %v569_v57 = vmax.f32 %v558_v54, 0.0  ;;  %v470_v54 = vld [vmem:[%s1359_s9] sm:$0xff] }
 0x121   : > { %v560_v43 = vpop.f32.mrf.mxu0 }
 0x122   : > { %v561_v51 = vadd.f32 %v560_v43, %v515_v50 }
 0x124   : > { %v570_v56 = vmax.f32 %v561_v51, 0.0 }
 0x129   : > { %v563_v45 = vpop.f32.mrf.mxu0 }
 0x12a   : > { %v564_v48 = vadd.f32 %v563_v45, %v520_v46  ;;  %v695_v46 = vpop.permute.xlu0 %694 }
 0x12c   : > { %v571_v55 = vmax.f32 %v564_v48, 0.0 }
 0x131   : > { %v566_v47 = vpop.f32.mrf.mxu0 }
 0x132   : > { %v567_v49 = vadd.f32 %v566_v47, %v525_v44 }
 0x134   : > { %v572_v52 = vmax.f32 %v567_v49, 0.0  ;;  %v690_v49 = vpop.permute.xlu1 %689 }
 0x136   : > { %650 = vmatpush.msra.mxu1 %v572_v52  ;;  %931 = vmatpush.msra.mxu3 %v572_v52 }
 0x138   : > { %651 = vmatpush.msra.mxu1 %v571_v55  ;;  %932 = vmatpush.msra.mxu3 %v571_v55  ;;  %v471_v55 = vld [vmem:[%s1359_s9 + $0x8] sm:$0xff] }
 0x13a   : > { %652 = vmatpush.msra.mxu1 %v570_v56  ;;  %933 = vmatpush.msra.mxu3 %v570_v56 }
 0x13c   : > { %653 = vmatpush.msra.mxu1 %v569_v57  ;;  %934 = vmatpush.msra.mxu3 %v569_v57  ;;  %v756_v57 = vpop.permute.xlu2 %755 }
 0x13d   : > { %914 = vmatmul.msk.f32.vlgmr.msra.gmra.mxu1 %vm613_vm1, %v446_v58  ;;  %919 = vmatmul.msk.f32.vlgmr.msra.gmra.mxu3 %vm613_vm1, %v451_v59  ;;  %v761_v59 = vpop.permute.xlu0 %760 }
 0x145   : > { %915 = vmatmul.msk.f32.gmra.mxu1 %vm613_vm1, %v447_v60  ;;  %920 = vmatmul.msk.f32.gmra.mxu3 %vm613_vm1, %v452_v61 }
 0x14d   : > { %916 = vmatmul.msk.f32.gmra.mxu1 %vm613_vm1, %v448_v62  ;;  %921 = vmatmul.msk.f32.gmra.mxu3 %vm613_vm1, %v453_v63 }
 0x155   : > { %917 = vmatmul.msk.f32.gmra.mxu1 %vm613_vm1, %v449_v0  ;;  %v797_v0 = vpop.permute.xlu1 %796 }
 0x15d   : > { %918 = vmatmul.msk.f32.gmra.mxu1 %vm613_vm1, %v450_v1  ;;  %v802_v1 = vpop.permute.xlu2 %801 }
 0x1ba   : > { %v655_v2 = vpop.f32.mrf.mxu1 }
 0x1bb   : > { %v656_v30 = vadd.f32 %v655_v2, %v576_v29 }
 0x1bd   : > { %v679_v33 = vmax.f32 %v656_v30, 0.0 }
 0x1c0   : > { %v670_v3 = vpop.f32.mrf.mxu3 }
 0x1c1   : > { %v671_v14 = vadd.f32 %v670_v3, %v601_v12 }
 0x1c2   : > { %v658_v4 = vpop.f32.mrf.mxu1 }
 0x1c3   : > { %v684_v19 = vmax.f32 %v671_v14, 0.0  ;;  %v659_v27 = vadd.f32 %v658_v4, %v581_v26 }
 0x1c5   : > { %v680_v32 = vmax.f32 %v659_v27, 0.0 }
 0x1c8   : > { %v673_v5 = vpop.f32.mrf.mxu3 }
 0x1c9   : > { %v674_v10 = vadd.f32 %v673_v5, %v606_v8 }
 0x1ca   : > { %v661_v7 = vpop.f32.mrf.mxu1 }
 0x1cb   : > { %v685_v17 = vmax.f32 %v674_v10, 0.0  ;;  %v662_v24 = vadd.f32 %v661_v7, %v586_v23 }
 0x1cd   : > { %v681_v31 = vmax.f32 %v662_v24, 0.0 }
 0x1d0   : > { %v676_v9 = vpop.f32.mrf.mxu3 }
 0x1d1   : > { %v677_v11 = vadd.f32 %v676_v9, %v611_v6  ;;  %v816_v9 = vpop.permute.xlu0 %815 }
 0x1d2   : > { %v664_v13 = vpop.f32.mrf.mxu1 }
 0x1d3   : > { %v686_v15 = vmax.f32 %v677_v11, 0.0  ;;  %v665_v21 = vadd.f32 %v664_v13, %v591_v18  ;;  %v818_v11 = vperm.slane %v816_v9, 0 }
 0x1d5   : > { %728 = vmatpush.msra.mxu2 %v686_v15  ;;  %v682_v28 = vmax.f32 %v665_v21, 0.0 }
 0x1d7   : > { %729 = vmatpush.msra.mxu2 %v685_v17 }
 0x1d9   : > { %730 = vmatpush.msra.mxu2 %v684_v19 }
 0x1da   : > { %v667_v20 = vpop.f32.mrf.mxu1 }
 0x1db   : > { %v668_v22 = vadd.f32 %v667_v20, %v596_v16 }
 0x1dd   : > { %v683_v25 = vmax.f32 %v668_v22, 0.0 }
 0x1df   : > { %731 = vmatpush.msra.mxu2 %v683_v25 }
 0x1e1   : > { %732 = vmatpush.msra.mxu2 %v682_v28 }
 0x1e3   : > { %733 = vmatpush.msra.mxu2 %v681_v31 }
 0x1e5   : > { %734 = vmatpush.msra.mxu2 %v680_v32 }
 0x1e7   : > { %735 = vmatpush.msra.mxu2 %v679_v33 }
 0x1e8   : > { %922 = vmatmul.msk.f32.vlgmr.msra.gmra.mxu2 %vm707_vm2, %v462_v34 }
 0x1f0   : > { %923 = vmatmul.msk.f32.gmra.mxu2 %vm707_vm2, %v463_v35 }
 0x1f8   : > { %924 = vmatmul.msk.f32.gmra.mxu2 %vm707_vm2, %v464_v36 }
 0x200   : > { %925 = vmatmul.msk.f32.gmra.mxu2 %vm707_vm2, %v465_v37 }
 0x26b   : > { %v737_v38 = vpop.f32.mrf.mxu2 }
 0x26c   : > { %v738_v50 = vadd.f32 %v737_v38, %v690_v49 }
 0x26e   : > { %v749_v53 = vmax.f32 %v738_v50, 0.0 }
 0x273   : > { %v740_v39 = vpop.f32.mrf.mxu2 }
 0x274   : > { %v741_v47 = vadd.f32 %v740_v39, %v695_v46 }
 0x276   : > { %v750_v52 = vmax.f32 %v741_v47, 0.0 }
 0x27b   : > { %v743_v40 = vpop.f32.mrf.mxu2 }
 0x27c   : > { %v744_v44 = vadd.f32 %v743_v40, %v700_v42 }
 0x27e   : > { %v751_v51 = vmax.f32 %v744_v44, 0.0 }
 0x283   : > { %v746_v43 = vpop.f32.mrf.mxu2 }
 0x284   : > { %v747_v45 = vadd.f32 %v746_v43, %v705_v41 }
 0x286   : > { %v752_v48 = vmax.f32 %v747_v45, 0.0 }
 0x288   : > { %781 = vmatpush.msrb.mxu3 %v752_v48 }
 0x28a   : > { %782 = vmatpush.msrb.mxu3 %v751_v51 }
 0x28c   : > { %783 = vmatpush.msrb.mxu3 %v750_v52 }
 0x28e   : > { %784 = vmatpush.msrb.mxu3 %v749_v53 }
 0x28f   : > { %926 = vmatmul.msk.f32.vlgmr.msrb.gmra.mxu3 %vm613_vm1, %v470_v54 }
 0x297   : > { %927 = vmatmul.msk.f32.gmra.mxu3 %vm613_vm1, %v471_v55 }
 0x312   : > { %v786_v56 = vpop.f32.mrf.mxu3 }
 0x313   : > { %v787_v58 = vadd.f32 %v786_v56, %v756_v57 }
 0x315   : > { %v792_v61 = vmax.f32 %v787_v58, 0.0 }
 0x317   : > { %v804_v2 = vmul.f32 %v797_v0, %v792_v61 }
 0x31a   : > { %v789_v60 = vpop.f32.mrf.mxu3 }
 0x31b   : > { %v790_v62 = vadd.f32 %v789_v60, %v761_v59 }
 0x31d   : > { %v793_v63 = vmax.f32 %v790_v62, 0.0 }
 0x31f   : > { %v805_v3 = vmul.f32 %v802_v1, %v793_v63 }
 0x321   : > { %v806_v4 = vadd.f32 %v805_v3, %v804_v2 }
 0x323   : > { %v807_v5 = vrot.slane %v806_v4, 4 }
 0x325   : > { %v808_v6 = vadd.f32 %v807_v5, %v806_v4 }
 0x327   : > { %v809_v7 = vrot.slane %v808_v6, 2 }
 0x329   : > { %v810_v8 = vadd.f32 %v809_v7, %v808_v6 }
 0x32b   : > { %v811_v10 = vrot.slane %v810_v8, 1 }
 0x32d   : > { %v812_v12 = vadd.f32 %v811_v10, %v810_v8 }
 0x32f   : > { %v819_v13 = vadd.f32 %v818_v11, %v812_v12 }
 0x331   : > { %v820_v14 = vmax.f32 %v819_v13, 0.0 }
 0x333   : > { %v928_v15 = vmul.f32 -1.442695, %v820_v14 }
 0x335   : > { %979 = vpow2.f32 %v928_v15 }
 0x33b   : > { %v980_v16 = vpop.eup %979 }
 0x33c   : > { %v824_v17 = vadd.f32 1.0, %v980_v16 }
 0x33e   : > { %981 = vrcp.f32 %v824_v17  ;;  %v836_v21 = vand.u32 2147483648, %v824_v17  ;;  %v834_v23 = vand.u32 2147483647, %v824_v17  ;;  %vm830_vm4 = vweird.f32 %v824_v17 }
 0x340   : > { %v837_v25 = vor.u32 1.1754944e-38, %v836_v21  ;;  %vm835_vm6 = vcmp.eq.f32.partialorder %v834_v23, 8.507059e+37 }
 0x344   : > { %v982_v18 = vpop.eup %981 }
 0x345   : > { %v826_v19 = vmul.f32 %v982_v18, %v824_v17  ;;  %vm831_vm3 = vweird.f32 %v982_v18 }
 0x346   : > { %vm832_vm5 = vmor %vm830_vm4, %vm831_vm3 }
 0x347   : > { %v827_v20 = vsub.f32 1.0, %v826_v19 }
 0x349   : > { %v828_v22 = vmul.f32 %v982_v18, %v827_v20 }
 0x34b   : > { %v829_v24 = vadd.f32 %v982_v18, %v828_v22 }
 0x34d   : > { %v833_v26 = vsel %vm832_vm5, %v982_v18, %v829_v24 }
 0x34e   : > { %v838_v27 = vsel %vm835_vm6, %v837_v25, %v833_v26 }
 0x34f   : > { %840 = vst [vmem:[%s430_s26] sm:$0x1] %v838_v27 }
 0x350   : > { %1010 = shalt.err (!%p1007_p3)
}
 0x351   : > { %935 = dma.vmem_to_hbm [thread:$0]  (%p1159_p5), %s853_s14, 16, %s855_s25, %s842_s16  }
 0x352 PF: > { %p941_p4 = scmp.ge.s32.totalorder %s1045_s30, 2  ;;  %s866_s18 = sand.u32 1, %s1033_s27  }
 0x353   : > { %s867_s15 = scalar_lea.sflag [#allocation4], %s866_s18 }
 0x354   : > { %p938_p7 = pnand %p941_p4, %p1163_p6 }
 0x356   : > { %p939_p8 = pneg %p938_p7 }
 0x358   : > { %1028 = dma.done.wait (%p939_p8), %s867_s15, 16  }
 0x359   : > { %1030 = vsyncadd (%p939_p8), %s867_s15, 4294967280  ;;  %s1372_s30 = sld [smem:[#allocation7_spill]]  ;;  %s1375_s27 = smov %s1037_s28 }
 0x35a   : > { %s1373_s26 = sld [smem:[#allocation6_spill]] }
 0x35b   : > { %s1374_s29 = sld [smem:[#allocation8_spill]] }
 0x35f   : > { %p25_p9 = scmp.ge.s32.totalorder %s1372_s30, 4  }
 0x360   : > { %s1376_s28 = smov %s1373_s26 }
 0x361   :  { %27 = sbr.rel (!%p25_p9) target bundleno = 6 (0x6), region = 107 }
 0x366   :  { %872 = vsyncpa [#allocation4], 1 }
 0x367   :  { %874 = vsyncpa [#allocation4 + $0x1], 1 }

</bundles_post_ra>
